<compile_context>
chip_gen: v7x
topology: tpu7x:2x2x1
jax: 0.10.0
libtpu: 0.0.40
codegen_flags: <defaults>
</compile_context>

<pallas_src>
import math
from functools import partial

import jax
import jax.numpy as jnp
from jax import lax
from jax.experimental import pallas as pl
from jax.experimental.pallas import tpu as pltpu


# --------------------------------------------------------------------------------------
# Stage 1: linears + cross-modal attention + gated features  ->  C_g_v, C_g_a
# --------------------------------------------------------------------------------------
def _frontmatter_kernel(
    img_ref, aud_ref,
    wqv_ref, bqv_ref, wqa_ref, bqa_ref,
    wkv_ref, bkv_ref, wka_ref, bka_ref,
    w9_ref, b9_ref, w10_ref, b10_ref,
    w11_ref, b11_ref, w12_ref, b12_ref,
    cgv_ref, cga_ref,
    *, norm_fact):
    img = img_ref[...]
    aud = aud_ref[...]

    def linear(x, w_ref, b_ref):
        return jnp.dot(x, w_ref[...], preferred_element_type=jnp.float32) + b_ref[...]

    def softmax_rows(x):  # numerically stable softmax over the last axis
        m = jnp.max(x, axis=-1, keepdims=True)
        e = jnp.exp(x - m)
        return e / jnp.sum(e, axis=-1, keepdims=True)

    def dot_nt(a, b):  # a @ b.T without an explicit XLU transpose
        return lax.dot_general(a, b, (((1,), (1,)), ((), ())),
                               preferred_element_type=jnp.float32)

    W_q_v = linear(img, wqv_ref, bqv_ref)
    W_q_a = linear(aud, wqa_ref, bqa_ref)
    w_k_a = linear(aud, wka_ref, bka_ref)
    W_k_v = linear(img, wkv_ref, bkv_ref)

    # NOTE: the PyTorch module applies 1/sqrt(dk) AFTER the softmax (non-standard but
    # that is the spec) - kept identical.
    alpha_va_norm = softmax_rows(dot_nt(W_q_v, w_k_a)) * norm_fact   # (N, N)
    alpha_av_norm = softmax_rows(dot_nt(W_q_a, W_k_v)) * norm_fact   # (N, N)

    beta_va = jax.nn.sigmoid(jnp.dot(alpha_va_norm, aud, preferred_element_type=jnp.float32))
    beta_av = jax.nn.sigmoid(jnp.dot(alpha_av_norm, img, preferred_element_type=jnp.float32))

    feature_v = (1.0 - beta_va) * img + beta_va * (img + aud)
    feature_a = (1.0 - beta_av) * aud + beta_av * (aud + img)

    cgv_ref[...] = (jax.nn.sigmoid(linear(feature_v, w9_ref, b9_ref)
                                   + linear(feature_a, w10_ref, b10_ref))
                    * feature_a).astype(cgv_ref.dtype)
    # C_g_a is the stage-2 MXU operand: emitted in that dtype once, here.
    cga_ref[...] = (jax.nn.sigmoid(linear(feature_a, w11_ref, b11_ref)
                                   + linear(feature_v, w12_ref, b12_ref))
                    * feature_v).astype(cga_ref.dtype)


# --------------------------------------------------------------------------------------
# Stage 2: streamed bilinear joint-attention map + output blend
#   grid = (K // TK, D // TI);  o "parallel", i (reduction) last / "arbitrary".
# --------------------------------------------------------------------------------------
def _bilinear_blend_kernel(cgv_ref, cga_ref, img_ref, aud_ref, wbr_ref, tm_ref,
                           out_ref, acc_ref, *, ti, tk):
    i = pl.program_id(1)

    @pl.when(i == 0)
    def _():
        acc_ref[...] = jnp.zeros_like(acc_ref)

    cga = cga_ref[...]                    # (N, D)   MXU dtype, resident across the grid
    w_flat = wbr_ref[...]                 # (D, TI*TK)  one contiguous HBM tile (bf16)
    # Single fused MXU call per grid step (contraction over j = D):
    #   tmp[n, t*TK + c] = sum_j C_g_a[n, j] * Wb[o0 + c, i0 + t, j]
    tmp = jnp.dot(cga, w_flat, preferred_element_type=jnp.float32)   # (N, TI*TK) f32

    cgv_blk = cgv_ref[...]                # (N, TI)  f32 columns of C_g_v for this i-block
    acc = acc_ref[...]                    # (N, TK)  f32
    for t in range(ti):                   # static unroll; 128-aligned static lane slices
        acc = acc + cgv_blk[:, t:t + 1] * tmp[:, t * tk:(t + 1) * tk]
    acc_ref[...] = acc

    @pl.when(i == pl.num_programs(1) - 1)
    def _():
        j_m = jax.nn.sigmoid(acc_ref[...])                  # (N, TK) f32
        t_m = tm_ref[0]                                     # scalar from SMEM
        out_ref[...] = (t_m * j_m * img_ref[...]
                        + (1.0 - j_m) * aud_ref[...]).astype(out_ref.dtype)


# --------------------------------------------------------------------------------------
# Wrapper
# --------------------------------------------------------------------------------------
def _largest_divisor_leq(n, cap):
    for c in range(min(cap, n), 0, -1):
        if n % c == 0:
            return c
    return 1


def cross_modal_attention(img, audio, params, dim_k, *,
                          wb_dtype=jnp.bfloat16, ti=None, tk=None):
    N, D = img.shape
    K = dim_k
    assert K == D, "module semantics require input_dim == dim_k (elementwise gating/blend)"
    norm_fact = 1.0 / math.sqrt(dim_k)

    flat = [params[k] for k in (
        "q_v_w", "q_v_b", "q_a_w", "q_a_b", "k_v_w", "k_v_b", "k_a_w", "k_a_b",
        "w9_w", "w9_b", "w10_w", "w10_b", "w11_w", "w11_b", "w12_w", "w12_b")]

    # ---- stage 1: single-block kernel producing C_g_v (f32), C_g_a (MXU dtype) ----
    # TODO(synk): at production (D=K=1024) on v7x (64 MiB/TC), cast the 8 (D,K) weights
    # to bf16 and/or grid stage 1 over the K output dim to cut peak VMEM residency.
    bytes1 = 4 * (2 * N * D + 8 * (D * K + K) + 4 * N * K) + (4 << 20)
    vmem1 = int(min(max(bytes1 + bytes1 // 4, 32 << 20), 48 << 20))
    cgv, cga = pl.pallas_call(
        partial(_frontmatter_kernel, norm_fact=norm_fact),
        out_shape=(jax.ShapeDtypeStruct((N, K), jnp.float32),   # C_g_v: elementwise use
                   jax.ShapeDtypeStruct((N, K), wb_dtype)),     # C_g_a: MXU operand
        in_specs=[pl.BlockSpec(memory_space=pltpu.MemorySpace.VMEM)] * (2 + len(flat)),
        out_specs=(pl.BlockSpec(memory_space=pltpu.MemorySpace.VMEM),
                   pl.BlockSpec(memory_space=pltpu.MemorySpace.VMEM)),
        compiler_params=pltpu.CompilerParams(vmem_limit_bytes=vmem1),
    )(img, audio, *flat)

    # ---- stage 2: gridded, contiguous HBM-streamed bilinear + blend ----
    wb_bytes = jnp.dtype(wb_dtype).itemsize
    if tk is None:
        tk = 128 if K % 128 == 0 else K          # lane-dense output column blocks
    if ti is None:
        cap = max(1, (16 << 20) // (D * tk * wb_bytes))   # keep each Wb tile ~<=16 MiB
        ti = _largest_divisor_leq(D, min(cap, D))         # -> ti=64 bf16 / 32 f32 at 1024
    assert D % ti == 0 and K % tk == 0
    n_o, n_i = K // tk, D // ti

    # One-time param prep (layout plumbing; cached alongside the params in production):
    #   Wb (o, i, j) -> pre-blocked + flattened (i_blk, o_blk, j, t*TK + c), bf16,
    #   so each streamed tile is one contiguous D*TI*TK region in HBM.
    wbr = (params["Wb"]
           .reshape(n_o, tk, n_i, ti, D)        # split o -> (ob, c),  i -> (ib, t)
           .transpose(2, 0, 4, 3, 1)            # (ib, ob, j, t, c)
           .reshape(n_i, n_o, D, ti * tk)
           .astype(wb_dtype))
    # C_g_v split into i-blocks (tiny, N*D f32) so each per-step block load is a plain
    # full-extent block; C_g_v stays f32 (it is only used elementwise).
    cgv_r = cgv.reshape(N, n_i, ti).transpose(1, 0, 2)        # (n_i, N, TI)
    t_m = params["t_m"].reshape((1,)).astype(jnp.float32)     # scalar -> SMEM

    wb_tile_bytes = D * ti * tk * wb_bytes
    bytes2 = (2 * wb_tile_bytes                     # Wb double buffer
              + 2 * N * ti * 4 + N * D * wb_bytes   # C_g_v block bufs, C_g_a resident
              + 6 * N * tk * 4                      # img/aud/out blocks + accumulator
              + (2 << 20))
    vmem2 = int(min(max(bytes2, 32 << 20), 56 << 20))   # <=56 MiB: headroom on v7x 64 MiB/TC

    out = pl.pallas_call(
        partial(_bilinear_blend_kernel, ti=ti, tk=tk),
        out_shape=jax.ShapeDtypeStruct((N, K), jnp.float32),
        grid=(n_o, n_i),
        in_specs=[
            pl.BlockSpec((None, N, ti), lambda o, i: (i, 0, 0)),            # C_g_v i-block
            pl.BlockSpec((N, D), lambda o, i: (0, 0)),                      # C_g_a resident
            pl.BlockSpec((N, tk), lambda o, i: (0, o)),                     # img o-columns
            pl.BlockSpec((N, tk), lambda o, i: (0, o)),                     # audio o-columns
            pl.BlockSpec((None, None, D, ti * tk), lambda o, i: (i, o, 0, 0)),  # Wb tile
            pl.BlockSpec(memory_space=pltpu.MemorySpace.SMEM),              # t_m scalar
        ],
        out_specs=pl.BlockSpec((N, tk), lambda o, i: (0, o)),
        scratch_shapes=[pltpu.VMEM((N, tk), jnp.float32)],
        compiler_params=pltpu.CompilerParams(
            # o stays "parallel" so v7x's two TensorCores each stream disjoint halves of
            # Wb; i (the reduction over C_g_v columns) is last / "arbitrary".
            dimension_semantics=("parallel", "arbitrary"),
            vmem_limit_bytes=vmem2),
    )(cgv_r, cga, img, audio, wbr, t_m)
    return out


# --------------------------------------------------------------------------------------
# Params / reference / test
# --------------------------------------------------------------------------------------
def init_params(key, input_dim, dim_k):
    ks = jax.random.split(key, 17)
    names = ["q_v", "q_a", "k_v", "k_a", "w9", "w10", "w11", "w12"]
    p = {}
    bound = 1.0 / math.sqrt(input_dim)
    for i, nm in enumerate(names):
        kw, kb = jax.random.split(ks[i])
        p[nm + "_w"] = jax.random.uniform(kw, (input_dim, dim_k), jnp.float32, -bound, bound)
        p[nm + "_b"] = jax.random.uniform(kb, (1, dim_k), jnp.float32, -bound, bound)
    bbound = 1.0 / math.sqrt(dim_k)
    p["Wb"] = jax.random.uniform(ks[16], (dim_k, dim_k, dim_k), jnp.float32, -bbound, bbound)
    p["t_m"] = jnp.ones((1, 1), jnp.float32)   # torch.ones([])
    return p


def reference(img, aud, p, dim_k, wb_dtype=jnp.float32):
    """Pure-JAX mirror of the PyTorch forward.  wb_dtype emulates the MXU-operand dtype
    used by the kernel for the bilinear (bf16 operands, f32 accumulation)."""
    norm = 1.0 / math.sqrt(dim_k)
    lin = lambda x, nm: x @ p[nm + "_w"] + p[nm + "_b"]
    W_q_v = lin(img, "q_v"); W_q_a = lin(aud, "q_a")
    w_k_a = lin(aud, "k_a"); W_k_v = lin(img, "k_v")
    alpha_va = jax.nn.softmax(W_q_v @ w_k_a.T, axis=1) * norm
    alpha_av = jax.nn.softmax(W_q_a @ W_k_v.T, axis=1) * norm
    beta_va = jax.nn.sigmoid(alpha_va @ aud)
    beta_av = jax.nn.sigmoid(alpha_av @ img)
    fv = (1 - beta_va) * img + beta_va * (img + aud)
    fa = (1 - beta_av) * aud + beta_av * (aud + img)
    Cgv = jax.nn.sigmoid(lin(fv, "w9") + lin(fa, "w10")) * fa
    Cga = jax.nn.sigmoid(lin(fa, "w11") + lin(fv, "w12")) * fv
    if jnp.dtype(wb_dtype) == jnp.dtype(jnp.float32):
        jm_arg = jnp.einsum('ni,oij,nj->no', Cgv, p["Wb"], Cga)
    else:
        t = jnp.einsum('nj,oij->noi', Cga.astype(wb_dtype), p["Wb"].astype(wb_dtype),
                       preferred_element_type=jnp.float32)
        jm_arg = jnp.einsum('noi,ni->no', t, Cgv)
    jm = jax.nn.sigmoid(jm_arg)
    return p["t_m"] * jm * img + (1 - jm) * aud


if __name__ == "__main__":
    key = jax.random.PRNGKey(0)
    N, D = 8, 32            # input_dim == dim_k (required by the module's elementwise ops)
    K = D
    k_img, k_aud, k_par = jax.random.split(key, 3)
    img = jax.random.normal(k_img, (N, D), jnp.float32)
    aud = jax.random.normal(k_aud, (N, D), jnp.float32)
    params = init_params(k_par, D, K)

    # Exact-precision path: f32 Wb stream, tight check against the f32 reference.
    out_f32 = jax.block_until_ready(
        cross_modal_attention(img, aud, params, K, wb_dtype=jnp.float32))
    ref_f32 = reference(img, aud, params, K, wb_dtype=jnp.float32)
    assert out_f32.shape == (N, D)
    err_f = float(jnp.max(jnp.abs(out_f32 - ref_f32)))
    assert jnp.allclose(out_f32, ref_f32, atol=2e-4, rtol=2e-4), err_f

    # Default fast path: Wb + C_g_a streamed as bf16 MXU operands (f32 accumulation);
    # compared against a reference that applies the same operand casts.
    out_bf16 = jax.block_until_ready(cross_modal_attention(img, aud, params, K))
    ref_bf16 = reference(img, aud, params, K, wb_dtype=jnp.bfloat16)
    assert out_bf16.shape == (N, D)
    err_b = float(jnp.max(jnp.abs(out_bf16 - ref_bf16)))
    assert jnp.allclose(out_bf16, ref_bf16, atol=2e-2, rtol=2e-2), err_b

    print("KERNEL_OK")
</pallas_src>

<mosaic_0001>
module attributes {stable_mosaic.version = 11 : i64} {
  func.func @_frontmatter_kernel(%arg0: memref<8x32xf32, #tpu.memory_space<vmem>>, %arg1: memref<8x32xf32, #tpu.memory_space<vmem>>, %arg2: memref<32x32xf32, #tpu.memory_space<vmem>>, %arg3: memref<1x32xf32, #tpu.memory_space<vmem>>, %arg4: memref<32x32xf32, #tpu.memory_space<vmem>>, %arg5: memref<1x32xf32, #tpu.memory_space<vmem>>, %arg6: memref<32x32xf32, #tpu.memory_space<vmem>>, %arg7: memref<1x32xf32, #tpu.memory_space<vmem>>, %arg8: memref<32x32xf32, #tpu.memory_space<vmem>>, %arg9: memref<1x32xf32, #tpu.memory_space<vmem>>, %arg10: memref<32x32xf32, #tpu.memory_space<vmem>>, %arg11: memref<1x32xf32, #tpu.memory_space<vmem>>, %arg12: memref<32x32xf32, #tpu.memory_space<vmem>>, %arg13: memref<1x32xf32, #tpu.memory_space<vmem>>, %arg14: memref<32x32xf32, #tpu.memory_space<vmem>>, %arg15: memref<1x32xf32, #tpu.memory_space<vmem>>, %arg16: memref<32x32xf32, #tpu.memory_space<vmem>>, %arg17: memref<1x32xf32, #tpu.memory_space<vmem>>, %arg18: memref<8x32xf32, #tpu.memory_space<vmem>>, %arg19: memref<8x32xf32, #tpu.memory_space<vmem>>) attributes {dimension_semantics = [], scalar_prefetch = 0 : i64, scratch_operands = 0 : i64, tpu.core_type = #tpu.core_type<tc>} {
    %c0 = arith.constant 0 : index
    %c0_0 = arith.constant 0 : index
    %0 = vector.load %arg0[%c0, %c0_0] : memref<8x32xf32, #tpu.memory_space<vmem>>, vector<8x32xf32>
    %c0_1 = arith.constant 0 : index
    %c0_2 = arith.constant 0 : index
    %1 = vector.load %arg1[%c0_1, %c0_2] : memref<8x32xf32, #tpu.memory_space<vmem>>, vector<8x32xf32>
    %c0_3 = arith.constant 0 : index
    %c0_4 = arith.constant 0 : index
    %2 = vector.load %arg2[%c0_3, %c0_4] : memref<32x32xf32, #tpu.memory_space<vmem>>, vector<32x32xf32>
    %cst = arith.constant dense<0.000000e+00> : vector<8x32xf32>
    %3 = tpu.matmul %0, %2, %cst {dimension_numbers = #tpu.dot_dimension_numbers<[1], [0], [0], [1], [0, 0, 1, 1], [], []>} : vector<8x32xf32>, vector<32x32xf32>, vector<8x32xf32> -> vector<8x32xf32>
    %c0_5 = arith.constant 0 : index
    %c0_6 = arith.constant 0 : index
    %4 = vector.load %arg3[%c0_5, %c0_6] : memref<1x32xf32, #tpu.memory_space<vmem>>, vector<1x32xf32>
    %5 = vector.broadcast %4 : vector<1x32xf32> to vector<8x32xf32>
    %6 = arith.addf %3, %5 : vector<8x32xf32>
    %c0_7 = arith.constant 0 : index
    %c0_8 = arith.constant 0 : index
    %7 = vector.load %arg4[%c0_7, %c0_8] : memref<32x32xf32, #tpu.memory_space<vmem>>, vector<32x32xf32>
    %cst_9 = arith.constant dense<0.000000e+00> : vector<8x32xf32>
    %8 = tpu.matmul %1, %7, %cst_9 {dimension_numbers = #tpu.dot_dimension_numbers<[1], [0], [0], [1], [0, 0, 1, 1], [], []>} : vector<8x32xf32>, vector<32x32xf32>, vector<8x32xf32> -> vector<8x32xf32>
    %c0_10 = arith.constant 0 : index
    %c0_11 = arith.constant 0 : index
    %9 = vector.load %arg5[%c0_10, %c0_11] : memref<1x32xf32, #tpu.memory_space<vmem>>, vector<1x32xf32>
    %10 = vector.broadcast %9 : vector<1x32xf32> to vector<8x32xf32>
    %11 = arith.addf %8, %10 : vector<8x32xf32>
    %c0_12 = arith.constant 0 : index
    %c0_13 = arith.constant 0 : index
    %12 = vector.load %arg8[%c0_12, %c0_13] : memref<32x32xf32, #tpu.memory_space<vmem>>, vector<32x32xf32>
    %cst_14 = arith.constant dense<0.000000e+00> : vector<8x32xf32>
    %13 = tpu.matmul %1, %12, %cst_14 {dimension_numbers = #tpu.dot_dimension_numbers<[1], [0], [0], [1], [0, 0, 1, 1], [], []>} : vector<8x32xf32>, vector<32x32xf32>, vector<8x32xf32> -> vector<8x32xf32>
    %c0_15 = arith.constant 0 : index
    %c0_16 = arith.constant 0 : index
    %14 = vector.load %arg9[%c0_15, %c0_16] : memref<1x32xf32, #tpu.memory_space<vmem>>, vector<1x32xf32>
    %15 = vector.broadcast %14 : vector<1x32xf32> to vector<8x32xf32>
    %16 = arith.addf %13, %15 : vector<8x32xf32>
    %c0_17 = arith.constant 0 : index
    %c0_18 = arith.constant 0 : index
    %17 = vector.load %arg6[%c0_17, %c0_18] : memref<32x32xf32, #tpu.memory_space<vmem>>, vector<32x32xf32>
    %cst_19 = arith.constant dense<0.000000e+00> : vector<8x32xf32>
    %18 = tpu.matmul %0, %17, %cst_19 {dimension_numbers = #tpu.dot_dimension_numbers<[1], [0], [0], [1], [0, 0, 1, 1], [], []>} : vector<8x32xf32>, vector<32x32xf32>, vector<8x32xf32> -> vector<8x32xf32>
    %c0_20 = arith.constant 0 : index
    %c0_21 = arith.constant 0 : index
    %19 = vector.load %arg7[%c0_20, %c0_21] : memref<1x32xf32, #tpu.memory_space<vmem>>, vector<1x32xf32>
    %20 = vector.broadcast %19 : vector<1x32xf32> to vector<8x32xf32>
    %21 = arith.addf %18, %20 : vector<8x32xf32>
    %cst_22 = arith.constant dense<0.000000e+00> : vector<8x8xf32>
    %22 = tpu.matmul %6, %16, %cst_22 {dimension_numbers = #tpu.dot_dimension_numbers<[1], [1], [0], [0], [0, 0, 1, 0], [], []>} : vector<8x32xf32>, vector<8x32xf32>, vector<8x8xf32> -> vector<8x8xf32>
    %cst_23 = arith.constant dense<0xFF800000> : vector<8xf32>
    %23 = vector.multi_reduction <maximumf>, %22, %cst_23 [1] : vector<8x8xf32> to vector<8xf32>
    %24 = vector.shape_cast %23 : vector<8xf32> to vector<8x1xf32>
    %25 = vector.broadcast %24 : vector<8x1xf32> to vector<8x8xf32>
    %26 = arith.subf %22, %25 : vector<8x8xf32>
    %27 = math.exp %26 : vector<8x8xf32>
    %cst_24 = arith.constant dense<0.000000e+00> : vector<8xf32>
    %28 = vector.multi_reduction <add>, %27, %cst_24 [1] : vector<8x8xf32> to vector<8xf32>
    %29 = vector.shape_cast %28 : vector<8xf32> to vector<8x1xf32>
    %30 = vector.broadcast %29 : vector<8x1xf32> to vector<8x8xf32>
    %31 = arith.divf %27, %30 : vector<8x8xf32>
    %cst_25 = arith.constant 0.176776692 : f32
    %32 = vector.broadcast %cst_25 : f32 to vector<8x8xf32>
    %33 = arith.mulf %31, %32 : vector<8x8xf32>
    %cst_26 = arith.constant dense<0.000000e+00> : vector<8x8xf32>
    %34 = tpu.matmul %11, %21, %cst_26 {dimension_numbers = #tpu.dot_dimension_numbers<[1], [1], [0], [0], [0, 0, 1, 0], [], []>} : vector<8x32xf32>, vector<8x32xf32>, vector<8x8xf32> -> vector<8x8xf32>
    %cst_27 = arith.constant dense<0xFF800000> : vector<8xf32>
    %35 = vector.multi_reduction <maximumf>, %34, %cst_27 [1] : vector<8x8xf32> to vector<8xf32>
    %36 = vector.shape_cast %35 : vector<8xf32> to vector<8x1xf32>
    %37 = vector.broadcast %36 : vector<8x1xf32> to vector<8x8xf32>
    %38 = arith.subf %34, %37 : vector<8x8xf32>
    %39 = math.exp %38 : vector<8x8xf32>
    %cst_28 = arith.constant dense<0.000000e+00> : vector<8xf32>
    %40 = vector.multi_reduction <add>, %39, %cst_28 [1] : vector<8x8xf32> to vector<8xf32>
    %41 = vector.shape_cast %40 : vector<8xf32> to vector<8x1xf32>
    %42 = vector.broadcast %41 : vector<8x1xf32> to vector<8x8xf32>
    %43 = arith.divf %39, %42 : vector<8x8xf32>
    %cst_29 = arith.constant 0.176776692 : f32
    %44 = vector.broadcast %cst_29 : f32 to vector<8x8xf32>
    %45 = arith.mulf %43, %44 : vector<8x8xf32>
    %cst_30 = arith.constant dense<0.000000e+00> : vector<8x32xf32>
    %46 = tpu.matmul %33, %1, %cst_30 {dimension_numbers = #tpu.dot_dimension_numbers<[1], [0], [0], [1], [0, 0, 1, 1], [], []>} : vector<8x8xf32>, vector<8x32xf32>, vector<8x32xf32> -> vector<8x32xf32>
    %47 = arith.negf %46 : vector<8x32xf32>
    %48 = math.exp %47 : vector<8x32xf32>
    %cst_31 = arith.constant 1.000000e+00 : f32
    %49 = vector.broadcast %cst_31 : f32 to vector<8x32xf32>
    %50 = arith.addf %49, %48 : vector<8x32xf32>
    %51 = arith.divf %49, %50 : vector<8x32xf32>
    %cst_32 = arith.constant dense<0.000000e+00> : vector<8x32xf32>
    %52 = tpu.matmul %45, %0, %cst_32 {dimension_numbers = #tpu.dot_dimension_numbers<[1], [0], [0], [1], [0, 0, 1, 1], [], []>} : vector<8x8xf32>, vector<8x32xf32>, vector<8x32xf32> -> vector<8x32xf32>
    %53 = arith.negf %52 : vector<8x32xf32>
    %54 = math.exp %53 : vector<8x32xf32>
    %cst_33 = arith.constant 1.000000e+00 : f32
    %55 = vector.broadcast %cst_33 : f32 to vector<8x32xf32>
    %56 = arith.addf %55, %54 : vector<8x32xf32>
    %57 = arith.divf %55, %56 : vector<8x32xf32>
    %cst_34 = arith.constant 1.000000e+00 : f32
    %58 = vector.broadcast %cst_34 : f32 to vector<8x32xf32>
    %59 = arith.subf %58, %51 : vector<8x32xf32>
    %60 = arith.mulf %59, %0 : vector<8x32xf32>
    %61 = arith.addf %0, %1 : vector<8x32xf32>
    %62 = arith.mulf %51, %61 : vector<8x32xf32>
    %63 = arith.addf %60, %62 : vector<8x32xf32>
    %cst_35 = arith.constant 1.000000e+00 : f32
    %64 = vector.broadcast %cst_35 : f32 to vector<8x32xf32>
    %65 = arith.subf %64, %57 : vector<8x32xf32>
    %66 = arith.mulf %65, %1 : vector<8x32xf32>
    %67 = arith.addf %1, %0 : vector<8x32xf32>
    %68 = arith.mulf %57, %67 : vector<8x32xf32>
    %69 = arith.addf %66, %68 : vector<8x32xf32>
    %c0_36 = arith.constant 0 : index
    %c0_37 = arith.constant 0 : index
    %70 = vector.load %arg10[%c0_36, %c0_37] : memref<32x32xf32, #tpu.memory_space<vmem>>, vector<32x32xf32>
    %cst_38 = arith.constant dense<0.000000e+00> : vector<8x32xf32>
    %71 = tpu.matmul %63, %70, %cst_38 {dimension_numbers = #tpu.dot_dimension_numbers<[1], [0], [0], [1], [0, 0, 1, 1], [], []>} : vector<8x32xf32>, vector<32x32xf32>, vector<8x32xf32> -> vector<8x32xf32>
    %c0_39 = arith.constant 0 : index
    %c0_40 = arith.constant 0 : index
    %72 = vector.load %arg11[%c0_39, %c0_40] : memref<1x32xf32, #tpu.memory_space<vmem>>, vector<1x32xf32>
    %73 = vector.broadcast %72 : vector<1x32xf32> to vector<8x32xf32>
    %74 = arith.addf %71, %73 : vector<8x32xf32>
    %c0_41 = arith.constant 0 : index
    %c0_42 = arith.constant 0 : index
    %75 = vector.load %arg12[%c0_41, %c0_42] : memref<32x32xf32, #tpu.memory_space<vmem>>, vector<32x32xf32>
    %cst_43 = arith.constant dense<0.000000e+00> : vector<8x32xf32>
    %76 = tpu.matmul %69, %75, %cst_43 {dimension_numbers = #tpu.dot_dimension_numbers<[1], [0], [0], [1], [0, 0, 1, 1], [], []>} : vector<8x32xf32>, vector<32x32xf32>, vector<8x32xf32> -> vector<8x32xf32>
    %c0_44 = arith.constant 0 : index
    %c0_45 = arith.constant 0 : index
    %77 = vector.load %arg13[%c0_44, %c0_45] : memref<1x32xf32, #tpu.memory_space<vmem>>, vector<1x32xf32>
    %78 = vector.broadcast %77 : vector<1x32xf32> to vector<8x32xf32>
    %79 = arith.addf %76, %78 : vector<8x32xf32>
    %80 = arith.addf %74, %79 : vector<8x32xf32>
    %81 = arith.negf %80 : vector<8x32xf32>
    %82 = math.exp %81 : vector<8x32xf32>
    %cst_46 = arith.constant 1.000000e+00 : f32
    %83 = vector.broadcast %cst_46 : f32 to vector<8x32xf32>
    %84 = arith.addf %83, %82 : vector<8x32xf32>
    %85 = arith.divf %83, %84 : vector<8x32xf32>
    %86 = arith.mulf %85, %69 : vector<8x32xf32>
    %c0_47 = arith.constant 0 : index
    %c0_48 = arith.constant 0 : index
    %87 = vector.load %arg18[%c0_47, %c0_48] : memref<8x32xf32, #tpu.memory_space<vmem>>, vector<8x32xf32>
    tpu.vector_store %arg18[%c0_47, %c0_48], %86 {strides = array<i32>} : memref<8x32xf32, #tpu.memory_space<vmem>>, vector<8x32xf32>,
    %c0_49 = arith.constant 0 : index
    %c0_50 = arith.constant 0 : index
    %88 = vector.load %arg14[%c0_49, %c0_50] : memref<32x32xf32, #tpu.memory_space<vmem>>, vector<32x32xf32>
    %cst_51 = arith.constant dense<0.000000e+00> : vector<8x32xf32>
    %89 = tpu.matmul %69, %88, %cst_51 {dimension_numbers = #tpu.dot_dimension_numbers<[1], [0], [0], [1], [0, 0, 1, 1], [], []>} : vector<8x32xf32>, vector<32x32xf32>, vector<8x32xf32> -> vector<8x32xf32>
    %c0_52 = arith.constant 0 : index
    %c0_53 = arith.constant 0 : index
    %90 = vector.load %arg15[%c0_52, %c0_53] : memref<1x32xf32, #tpu.memory_space<vmem>>, vector<1x32xf32>
    %91 = vector.broadcast %90 : vector<1x32xf32> to vector<8x32xf32>
    %92 = arith.addf %89, %91 : vector<8x32xf32>
    %c0_54 = arith.constant 0 : index
    %c0_55 = arith.constant 0 : index
    %93 = vector.load %arg16[%c0_54, %c0_55] : memref<32x32xf32, #tpu.memory_space<vmem>>, vector<32x32xf32>
    %cst_56 = arith.constant dense<0.000000e+00> : vector<8x32xf32>
    %94 = tpu.matmul %63, %93, %cst_56 {dimension_numbers = #tpu.dot_dimension_numbers<[1], [0], [0], [1], [0, 0, 1, 1], [], []>} : vector<8x32xf32>, vector<32x32xf32>, vector<8x32xf32> -> vector<8x32xf32>
    %c0_57 = arith.constant 0 : index
    %c0_58 = arith.constant 0 : index
    %95 = vector.load %arg17[%c0_57, %c0_58] : memref<1x32xf32, #tpu.memory_space<vmem>>, vector<1x32xf32>
    %96 = vector.broadcast %95 : vector<1x32xf32> to vector<8x32xf32>
    %97 = arith.addf %94, %96 : vector<8x32xf32>
    %98 = arith.addf %92, %97 : vector<8x32xf32>
    %99 = arith.negf %98 : vector<8x32xf32>
    %100 = math.exp %99 : vector<8x32xf32>
    %cst_59 = arith.constant 1.000000e+00 : f32
    %101 = vector.broadcast %cst_59 : f32 to vector<8x32xf32>
    %102 = arith.addf %101, %100 : vector<8x32xf32>
    %103 = arith.divf %101, %102 : vector<8x32xf32>
    %104 = arith.mulf %103, %63 : vector<8x32xf32>
    %c0_60 = arith.constant 0 : index
    %c0_61 = arith.constant 0 : index
    %105 = vector.load %arg19[%c0_60, %c0_61] : memref<8x32xf32, #tpu.memory_space<vmem>>, vector<8x32xf32>
    tpu.vector_store %arg19[%c0_60, %c0_61], %104 {strides = array<i32>} : memref<8x32xf32, #tpu.memory_space<vmem>>, vector<8x32xf32>,
    return
  }
}

</mosaic_0001>

<bundles_post_ra>
// kernel: tpu_custom_call.1
= control target key start
LH: loop header
LB: loop body
LE: loop exit
PB: predicated region body
PF: predicated region fallthrough
CT: control target
= control target key end

     0   :  { %s2161_s0 = inlined_call_operand.hbm [shape: f32[8,32], index: 0, kind: input, shape index: {}]   ;;  %s2162_s1 = inlined_call_operand.hbm [shape: f32[8,32], index: 1, kind: input, shape index: {}]   ;;  %s2163_s2 = inlined_call_operand.hbm [shape: f32[32,32], index: 2, kind: input, shape index: {}]   ;;  %s2164_s3 = inlined_call_operand.vmem [shape: f32[1,32], index: 3, kind: input, shape index: {}]   ;;  %s2165_s4 = inlined_call_operand.hbm [shape: f32[32,32], index: 4, kind: input, shape index: {}]   ;;  %s2166_s5 = inlined_call_operand.vmem [shape: f32[1,32], index: 5, kind: input, shape index: {}]   ;;  %s2167_s6 = inlined_call_operand.hbm [shape: f32[32,32], index: 6, kind: input, shape index: {}]   ;;  %s2168_s7 = inlined_call_operand.vmem [shape: f32[1,32], index: 7, kind: input, shape index: {}]   ;;  %s2169_s8 = inlined_call_operand.hbm [shape: f32[32,32], index: 8, kind: input, shape index: {}]   ;;  %s2170_s9 = inlined_call_operand.vmem [shape: f32[1,32], index: 9, kind: input, shape index: {}]   ;;  %s2171_s10 = inlined_call_operand.vmem [shape: f32[32,32], index: 10, kind: input, shape index: {}]   ;;  %s2172_s11 = inlined_call_operand.vmem [shape: f32[1,32], index: 11, kind: input, shape index: {}]   ;;  %s2173_s12 = inlined_call_operand.hbm [shape: f32[32,32], index: 12, kind: input, shape index: {}]   ;;  %s2174_s13 = inlined_call_operand.vmem [shape: f32[1,32], index: 13, kind: input, shape index: {}]   ;;  %s2175_s14 = inlined_call_operand.hbm [shape: f32[32,32], index: 14, kind: input, shape index: {}]   ;;  %s2176_s15 = inlined_call_operand.vmem [shape: f32[1,32], index: 15, kind: input, shape index: {}]   ;;  %s2177_s16 = inlined_call_operand.hbm [shape: f32[32,32], index: 16, kind: input, shape index: {}]   ;;  %s2178_s17 = inlined_call_operand.vmem [shape: f32[1,32], index: 17, kind: input, shape index: {}]   ;;  %s2179_s18 = inlined_call_operand.hbm [shape: f32[8,32], index: 18, kind: output, shape index: {0}]   ;;  %s2180_s19 = inlined_call_operand.hbm [shape: f32[8,32], index: 19, kind: output, shape index: {1}]  }
   0x1   :  { %2184 = sst [smem:[#allocation27_spill]] %s2161_s0 }
   0x2   :  { %2185 = sst [smem:[#allocation28_spill]] %s2162_s1 }
   0x3   :  { %2186 = sst [smem:[#allocation29_spill]] %s2163_s2 }
   0x4   :  { %2187 = sst [smem:[#allocation30_spill]] %s2164_s3 }
   0x5   :  { %25 = vsyncpa [#allocation3], 0 }
   0x6   :  { %26 = vsyncpa [#allocation6], 0 }
   0x7   :  { %27 = vsyncpa [#allocation9], 0 }
   0x8   :  { %28 = vsyncpa [#allocation12], 0 }
   0x9   :  { %29 = vsyncpa [#allocation15], 0 }
   0xa   :  { %30 = vsyncpa [#allocation4], 0 }
   0xb   :  { %31 = vsyncpa [#allocation19], 0  ;;  %s1773_s0 = smov [#allocation5]   ;;  %s2188_s1 = sld [smem:[#allocation28_spill]] }
   0xc   :  { %s48_s30 = sshll.u32 %s1773_s0, 4  ;;  %s49_s30 = int_to_ptr.vmem [resolvable:$true] %s48_s30 }
  0x11   :  { %s1517_s22 = scalar_lea.hbm %s2188_s1, 128 }
  0x12   :  { %p1518_p0 = scmp.ne.s32.totalorder %s2188_s1, %s1517_s22  ;;  %p1521_p1 = scmp.lt.u32.totalorder %s1517_s22, %s2188_s1 }
  0x14   :  { %p1523_p2 = pnand %p1521_p1, %p1518_p0 }
  0x16   :  { %1526 = shalt.err (!%p1523_p2)
}
  0x17   :  { %s1527_s3 = scalar_lea.vmem %s49_s30, 128  ;;  %p1532_p4 = scmp.lt.s32.totalorder %s49_s30, %s49_s30 }
  0x18   :  { %p1528_p3 = scmp.ne.s32.totalorder %s49_s30, %s1527_s3  ;;  %p1533_p5 = scmp.lt.s32.totalorder %s1527_s3, %s1527_s3 }
  0x1a   :  { %p1534_p6 = por %p1533_p5, %p1532_p4 }
  0x1c   :  { %p1535_p7 = pnand %p1534_p6, %p1528_p3 }
  0x1e   :  { %1538 = shalt.err (!%p1535_p7)
}
  0x1f   :  { %51 = dma.hbm_to_vmem [thread:$0]  %s2188_s1, 128, %s49_s30, [#allocation6]  }
  0x20   :  { %s1774_s28 = smov [#allocation8]   ;;  %s1775_s0 = smov [#allocation11]  }
  0x21   :  { %s71_s29 = sshll.u32 %s1774_s28, 4  ;;  %s99_s20 = sshll.u32 %s1775_s0, 4  ;;  %s72_s29 = int_to_ptr.vmem [resolvable:$true] %s71_s29  ;;  %s100_s20 = int_to_ptr.vmem [resolvable:$true] %s99_s20 }
  0x22   :  { %s1539_s2 = scalar_lea.hbm %s2165_s4, 512 }
  0x23   :  { %p1540_p8 = scmp.ne.s32.totalorder %s2165_s4, %s1539_s2  ;;  %p1543_p9 = scmp.lt.u32.totalorder %s1539_s2, %s2165_s4 }
  0x25   :  { %p1545_p10 = pnand %p1543_p9, %p1540_p8 }
  0x27   :  { %1548 = shalt.err (!%p1545_p10)
}
  0x28   :  { %s1549_s30 = scalar_lea.vmem %s72_s29, 512  ;;  %p1554_p12 = scmp.lt.s32.totalorder %s72_s29, %s72_s29 }
  0x29   :  { %p1550_p11 = scmp.ne.s32.totalorder %s72_s29, %s1549_s30  ;;  %p1555_p13 = scmp.lt.s32.totalorder %s1549_s30, %s1549_s30 }
  0x2b   :  { %p1556_p0 = por %p1555_p13, %p1554_p12 }
  0x2d   :  { %p1557_p1 = pnand %p1556_p0, %p1550_p11 }
  0x2f   :  { %1560 = shalt.err (!%p1557_p1)
}
  0x30   :  { %s1776_s1 = smov 128   ;;  %s1777_s26 = smov 8  }
  0x31   :  { %77 = dma.hbm_to_vmem [thread:$0]  %s2165_s4, 512, %s72_s29, [#allocation9], %s1776_s1, %s1776_s1, %s1777_s26  }
  0x32   :  { %s1561_s22 = scalar_lea.hbm %s2169_s8, 512 }
  0x33   :  { %p1562_p2 = scmp.ne.s32.totalorder %s2169_s8, %s1561_s22  ;;  %p1565_p3 = scmp.lt.u32.totalorder %s1561_s22, %s2169_s8 }
  0x35   :  { %p1567_p4 = pnand %p1565_p3, %p1562_p2 }
  0x37   :  { %1570 = shalt.err (!%p1567_p4)
}
  0x38   :  { %s1571_s3 = scalar_lea.vmem %s100_s20, 512  ;;  %p1576_p6 = scmp.lt.s32.totalorder %s100_s20, %s100_s20 }
  0x39   :  { %p1572_p5 = scmp.ne.s32.totalorder %s100_s20, %s1571_s3  ;;  %p1577_p7 = scmp.lt.s32.totalorder %s1571_s3, %s1571_s3 }
  0x3b   :  { %p1578_p8 = por %p1577_p7, %p1576_p6 }
  0x3d   :  { %p1579_p9 = pnand %p1578_p8, %p1572_p5 }
  0x3f   :  { %1582 = shalt.err (!%p1579_p9)
}
  0x40   :  { %105 = dma.hbm_to_vmem [thread:$0]  %s2169_s8, 512, %s100_s20, [#allocation12], %s1776_s1, %s1776_s1, %s1777_s26  }
  0x41   :  { %s1778_s30 = smov [#allocation14]   ;;  %s1779_s28 = smov [#allocation2]  }
  0x42   :  { %s131_s27 = sshll.u32 %s1778_s30, 4  ;;  %s38_s0 = sshll.u32 %s1779_s28, 4  ;;  %s132_s27 = int_to_ptr.vmem [resolvable:$true] %s131_s27  ;;  %s39_s0 = int_to_ptr.vmem [resolvable:$true] %s38_s0 }
  0x43   :  { %s1583_s2 = scalar_lea.hbm %s2175_s14, 512 }
  0x44   :  { %p1584_p10 = scmp.ne.s32.totalorder %s2175_s14, %s1583_s2  ;;  %p1587_p11 = scmp.lt.u32.totalorder %s1583_s2, %s2175_s14 }
  0x46   :  { %p1589_p12 = pnand %p1587_p11, %p1584_p10 }
  0x48   :  { %1592 = shalt.err (!%p1589_p12)
}
  0x49   :  { %s1593_s8 = scalar_lea.vmem %s132_s27, 512  ;;  %p1598_p0 = scmp.lt.s32.totalorder %s132_s27, %s132_s27 }
  0x4a   :  { %p1594_p13 = scmp.ne.s32.totalorder %s132_s27, %s1593_s8  ;;  %p1599_p1 = scmp.lt.s32.totalorder %s1593_s8, %s1593_s8 }
  0x4c   :  { %p1600_p2 = por %p1599_p1, %p1598_p0 }
  0x4e   :  { %p1601_p3 = pnand %p1600_p2, %p1594_p13 }
  0x50   :  { %1604 = shalt.err (!%p1601_p3)
}
  0x51   :  { %137 = dma.hbm_to_vmem [thread:$0]  %s2175_s14, 512, %s132_s27, [#allocation15], %s1776_s1, %s1776_s1, %s1777_s26  }
  0x52   :  { %s2189_s28 = sld [smem:[#allocation27_spill]] }
  0x58   :  { %s1605_s21 = scalar_lea.hbm %s2189_s28, 128 }
  0x59   :  { %p1606_p4 = scmp.ne.s32.totalorder %s2189_s28, %s1605_s21  ;;  %p1609_p5 = scmp.lt.u32.totalorder %s1605_s21, %s2189_s28 }
  0x5b   :  { %p1611_p6 = pnand %p1609_p5, %p1606_p4 }
  0x5d   :  { %1614 = shalt.err (!%p1611_p6)
}
  0x5e   :  { %s1615_s25 = scalar_lea.vmem %s39_s0, 128  ;;  %p1620_p8 = scmp.lt.s32.totalorder %s39_s0, %s39_s0 }
  0x5f   :  { %p1616_p7 = scmp.ne.s32.totalorder %s39_s0, %s1615_s25  ;;  %p1621_p9 = scmp.lt.s32.totalorder %s1615_s25, %s1615_s25 }
  0x61   :  { %p1622_p10 = por %p1621_p9, %p1620_p8 }
  0x63   :  { %p1623_p11 = pnand %p1622_p10, %p1616_p7 }
  0x65   :  { %1626 = shalt.err (!%p1623_p11)
}
  0x66   :  { %41 = dma.hbm_to_vmem [thread:$0]  %s2189_s28, 128, %s39_s0, [#allocation3]  }
  0x67   :  { %s1780_s3 = smov [#allocation7]   ;;  %s1781_s20 = smov [#allocation10]  }
  0x68   :  { %s57_s8 = sshll.u32 %s1780_s3, 4  ;;  %s85_s4 = sshll.u32 %s1781_s20, 4  ;;  %s58_s8 = int_to_ptr.vmem [resolvable:$true] %s57_s8  ;;  %s86_s4 = int_to_ptr.vmem [resolvable:$true] %s85_s4 }
  0x69   :  { %s2190_s21 = sld [smem:[#allocation29_spill]] }
  0x6f   :  { %s1627_s22 = scalar_lea.hbm %s2190_s21, 512 }
  0x70   :  { %p1628_p12 = scmp.ne.s32.totalorder %s2190_s21, %s1627_s22  ;;  %p1631_p13 = scmp.lt.u32.totalorder %s1627_s22, %s2190_s21 }
  0x72   :  { %p1633_p0 = pnand %p1631_p13, %p1628_p12 }
  0x74   :  { %1636 = shalt.err (!%p1633_p0)
}
  0x75   :  { %s1637_s0 = scalar_lea.vmem %s58_s8, 512  ;;  %p1642_p2 = scmp.lt.s32.totalorder %s58_s8, %s58_s8 }
  0x76   :  { %p1638_p1 = scmp.ne.s32.totalorder %s58_s8, %s1637_s0  ;;  %p1643_p3 = scmp.lt.s32.totalorder %s1637_s0, %s1637_s0 }
  0x78   :  { %p1644_p4 = por %p1643_p3, %p1642_p2 }
  0x7a   :  { %p1645_p5 = pnand %p1644_p4, %p1638_p1 }
  0x7c   :  { %1648 = shalt.err (!%p1645_p5)
}
  0x7d   :  { %63 = dma.hbm_to_vmem [thread:$0]  %s2190_s21, 512, %s58_s8, [#allocation6], %s1776_s1, %s1776_s1, %s1777_s26  }
  0x7e   :  { %s1649_s20 = scalar_lea.hbm %s2167_s6, 512 }
  0x7f   :  { %p1650_p6 = scmp.ne.s32.totalorder %s2167_s6, %s1649_s20  ;;  %p1653_p7 = scmp.lt.u32.totalorder %s1649_s20, %s2167_s6 }
  0x81   :  { %p1655_p8 = pnand %p1653_p7, %p1650_p6 }
  0x83   :  { %1658 = shalt.err (!%p1655_p8)
}
  0x84   :  { %s1659_s23 = scalar_lea.vmem %s86_s4, 512  ;;  %p1664_p10 = scmp.lt.s32.totalorder %s86_s4, %s86_s4 }
  0x85   :  { %p1660_p9 = scmp.ne.s32.totalorder %s86_s4, %s1659_s23  ;;  %p1665_p11 = scmp.lt.s32.totalorder %s1659_s23, %s1659_s23 }
  0x87   :  { %p1666_p12 = por %p1665_p11, %p1664_p10 }
  0x89   :  { %p1667_p13 = pnand %p1666_p12, %p1660_p9 }
  0x8b   :  { %1670 = shalt.err (!%p1667_p13)
}
  0x8c   :  { %91 = dma.hbm_to_vmem [thread:$0]  %s2167_s6, 512, %s86_s4, [#allocation9], %s1776_s1, %s1776_s1, %s1777_s26  }
  0x8d   :  { %s1782_s24 = smov [#allocation13]   ;;  %s1783_s0 = smov [#allocation16]  }
  0x8e   :  { %s117_s25 = sshll.u32 %s1782_s24, 4  ;;  %s145_s28 = sshll.u32 %s1783_s0, 4  ;;  %s118_s25 = int_to_ptr.vmem [resolvable:$true] %s117_s25  ;;  %s146_s28 = int_to_ptr.vmem [resolvable:$true] %s145_s28 }
  0x8f   :  { %s1671_s3 = scalar_lea.hbm %s2173_s12, 512 }
  0x90   :  { %p1672_p0 = scmp.ne.s32.totalorder %s2173_s12, %s1671_s3  ;;  %p1675_p1 = scmp.lt.u32.totalorder %s1671_s3, %s2173_s12 }
  0x92   :  { %p1677_p2 = pnand %p1675_p1, %p1672_p0 }
  0x94   :  { %1680 = shalt.err (!%p1677_p2)
}
  0x95   :  { %s1681_s6 = scalar_lea.vmem %s118_s25, 512  ;;  %p1686_p4 = scmp.lt.s32.totalorder %s118_s25, %s118_s25 }
  0x96   :  { %p1682_p3 = scmp.ne.s32.totalorder %s118_s25, %s1681_s6  ;;  %p1687_p5 = scmp.lt.s32.totalorder %s1681_s6, %s1681_s6 }
  0x98   :  { %p1688_p6 = por %p1687_p5, %p1686_p4 }
  0x9a   :  { %p1689_p7 = pnand %p1688_p6, %p1682_p3 }
  0x9c   :  { %1692 = shalt.err (!%p1689_p7)
}
  0x9d   :  { %123 = dma.hbm_to_vmem [thread:$0]  %s2173_s12, 512, %s118_s25, [#allocation12], %s1776_s1, %s1776_s1, %s1777_s26  }
  0x9e   :  { %s1693_s21 = scalar_lea.hbm %s2177_s16, 512 }
  0x9f   :  { %p1694_p8 = scmp.ne.s32.totalorder %s2177_s16, %s1693_s21  ;;  %p1697_p9 = scmp.lt.u32.totalorder %s1693_s21, %s2177_s16 }
  0xa1   :  { %p1699_p10 = pnand %p1697_p9, %p1694_p8 }
  0xa3   :  { %1702 = shalt.err (!%p1699_p10)
}
  0xa4   :  { %s1703_s3 = scalar_lea.vmem %s146_s28, 512  ;;  %p1708_p12 = scmp.lt.s32.totalorder %s146_s28, %s146_s28 }
  0xa5   :  { %p1704_p11 = scmp.ne.s32.totalorder %s146_s28, %s1703_s3  ;;  %p1709_p13 = scmp.lt.s32.totalorder %s1703_s3, %s1703_s3 }
  0xa7   :  { %p1710_p0 = por %p1709_p13, %p1708_p12 }
  0xa9   :  { %p1711_p1 = pnand %p1710_p0, %p1704_p11 }
  0xab   :  { %1714 = shalt.err (!%p1711_p1)
}
  0xac   :  { %151 = dma.hbm_to_vmem [thread:$0]  %s2177_s16, 512, %s146_s28, [#allocation15], %s1776_s1, %s1776_s1, %s1777_s26  }
  0xad   :  { %1759 = dma.done.wait [#allocation3], 128  }
  0xae   :  { %1760 = vsyncadd [#allocation3], 4294967168 }
  0xaf   :  { %1761 = dma.done.wait [#allocation6], 640  }
  0xb0   :  { %1762 = vsyncadd [#allocation6], 4294966656 }
  0xb1   :  { %1763 = dma.done.wait [#allocation9], 1024  }
  0xb2   :  { %1764 = vsyncadd [#allocation9], 4294966272 }
  0xb3   :  { %1765 = dma.done.wait [#allocation12], 1024  }
  0xb4   :  { %1766 = vsyncadd [#allocation12], 4294966272 }
  0xb5   :  { %1767 = dma.done.wait [#allocation15], 1024  }
  0xb6   :  { %1768 = vsyncadd [#allocation15], 4294966272  ;;  %v1784_v0 = vmov 0.0|0.0   ;;  %vm1785_vm0 = vmmov 0   ;;  %v1786_v1 = vmov 0.0   ;;  %v183_v2 = vld [vmem:[#allocation7] sm:$0xff] }
  0xb7   :  { %1421 = vmatprep.subr.bf16.mxu0 %v1784_v0  ;;  %1427 = vmatprep.subr.bf16.mxu1 %v1784_v0  ;;  %v184_v3 = vld [vmem:[#allocation7 + $0x8] sm:$0xff]  ;;  %v268_v4 = vld [vmem:[#allocation8] sm:$0xff]  ;;  %v185_v7 = vld [vmem:[#allocation7 + $0x10] sm:$0xff]  ;;  %vm194_vm1 = vcmask 261120   ;;  %s2191_s30 = sld [smem:[#allocation30_spill]]  ;;  %vm590_vm2 = vcmask 64512  }
  0xb8   :  { %1321 = vmatprep.mubr.msk.f32.mxu0 %vm1785_vm0, %v1786_v1  ;;  %1332 = vmatprep.mubr.msk.f32.mxu1 %vm1785_vm0, %v1786_v1  ;;  %v1422_v5 = vpack.c.bf16 %v184_v3, %v183_v2  ;;  %v269_v6 = vld [vmem:[#allocation8 + $0x8] sm:$0xff]  ;;  %v186_v8 = vld [vmem:[#allocation7 + $0x18] sm:$0xff]  ;;  %v270_v10 = vld [vmem:[#allocation8 + $0x10] sm:$0xff] }
  0xb9   :  { %v1428_v9 = vpack.c.bf16 %v269_v6, %v268_v4  ;;  %v271_v11 = vld [vmem:[#allocation8 + $0x18] sm:$0xff]  ;;  %v1425_v12 = vpack.c.bf16 %v186_v8, %v185_v7  ;;  %v352_v14 = vld [vmem:[#allocation11] sm:$0xff]  ;;  %v353_v15 = vld [vmem:[#allocation11 + $0x8] sm:$0xff] }
  0xba   :  { %1423 = vmatpush3.bf16.msra.mxu0 %v1422_v5  ;;  %v1431_v13 = vpack.c.bf16 %v271_v11, %v270_v10  ;;  %v433_v16 = vld [vmem:[#allocation10] sm:$0xff]  ;;  %v434_v17 = vld [vmem:[#allocation10 + $0x8] sm:$0xff]  ;;  %v2026_v18 = vld [vmem:[#allocation2] sm:$0xff]  ;;  %v1434_v19 = vpack.c.bf16 %v353_v15, %v352_v14 }
  0xbb   :  { %1429 = vmatpush3.bf16.msra.mxu1 %v1428_v9  ;;  %1424 = vmatprep.subr.bf16.mxu0 %v1784_v0  ;;  %v2029_v20 = vld [vmem:[#allocation5] sm:$0xff]  ;;  %v1440_v21 = vpack.c.bf16 %v434_v17, %v433_v16  ;;  %v354_v22 = vld [vmem:[#allocation11 + $0x10] sm:$0xff]  ;;  %v860_v9 = vld [vmem:[%s2171_s10 + $0x10] sm:$0xff] }
  0xbc   :  { %1430 = vmatprep.subr.bf16.mxu1 %v1784_v0  ;;  %v355_v23 = vld [vmem:[#allocation11 + $0x18] sm:$0xff]  ;;  %v435_v24 = vld [vmem:[#allocation10 + $0x10] sm:$0xff]  ;;  %v861_v10 = vld [vmem:[%s2171_s10 + $0x18] sm:$0xff] }
  0xbd   :  { %v436_v25 = vld [vmem:[#allocation10 + $0x18] sm:$0xff]  ;;  %v1437_v26 = vpack.c.bf16 %v355_v23, %v354_v22  ;;  %v1243_v32 = vld [vmem:[%s2170_s9] ss:$0 sm:$0xff]  ;;  %v1035_v11 = vld [vmem:[#allocation14] sm:$0xff] }
  0xbe   :  { %1426 = vmatpush3.bf16.msra.mxu0 %v1425_v12  ;;  %v1443_v27 = vpack.c.bf16 %v436_v25, %v435_v24  ;;  %v1245_v33 = vld [vmem:[%s2168_s7] ss:$0 sm:$0xff]  ;;  %v859_v7 = vld [vmem:[%s2171_s10 + $0x8] sm:$0xff]  ;;  %v1449_v12 = vpack.c.bf16 %v861_v10, %v860_v9 }
  0xbf   :  { %1432 = vmatpush3.bf16.msra.mxu1 %v1431_v13  ;;  %1433 = vmatprep.subr.bf16.mxu0 %v1784_v0  ;;  %v1239_v35 = vld [vmem:[%s2191_s30] ss:$0 sm:$0xff]  ;;  %v1036_v13 = vld [vmem:[#allocation14 + $0x8] sm:$0xff]  ;;  %v1038_v16 = vld [vmem:[#allocation14 + $0x18] sm:$0xff] }
  0xc0   :  { %1439 = vmatprep.subr.bf16.mxu1 %v1784_v0  ;;  %v1241_v39 = vld [vmem:[%s2166_s5] ss:$0 sm:$0xff]  ;;  %v1458_v14 = vpack.c.bf16 %v1036_v13, %v1035_v11 }
  0xc1   :  { %1322 = vmatmul.mubr.msk.f32.vlgmr.msra.gmra.mrb[0].mxu0 %vm194_vm1, %v2026_v18  ;;  %v858_v6 = vld [vmem:[%s2171_s10] sm:$0xff] }
  0xc2   :  { %1333 = vmatmul.mubr.msk.f32.vlgmr.msra.gmra.mrb[0].mxu1 %vm194_vm1, %v2029_v20  ;;  %1435 = vmatpush3.bf16.msra.mxu0 %v1434_v19  ;;  %v1446_v8 = vpack.c.bf16 %v859_v7, %v858_v6  ;;  %v1037_v15 = vld [vmem:[#allocation14 + $0x10] sm:$0xff] }
  0xc3   :  { %1441 = vmatpush3.bf16.msra.mxu1 %v1440_v21  ;;  %1436 = vmatprep.subr.bf16.mxu0 %v1784_v0  ;;  %v1461_v17 = vpack.c.bf16 %v1038_v16, %v1037_v15 }
  0xc4   :  { %1442 = vmatprep.subr.bf16.mxu1 %v1784_v0  ;;  %1343 = vmatprep.mubr.msk.f32.mxu0 %vm1785_vm0, %v1786_v1 }
  0xc5   :  { %1354 = vmatprep.mubr.msk.f32.mxu1 %vm1785_vm0, %v1786_v1 }
  0xc6   :  { %1438 = vmatpush3.bf16.msra.mxu0 %v1437_v26 }
  0xc7   :  { %1444 = vmatpush3.bf16.msra.mxu1 %v1443_v27  ;;  %1357 = vmatprep.subr.mxu0 %v1786_v1 }
  0xc8   :  { %1362 = vmatprep.subr.mxu1 %v1786_v1 }
  0xc9   :  { %1344 = vmatmul.mubr.msk.f32.vlgmr.msra.gmra.mrb[2].mxu0 %vm194_vm1, %v2029_v20 }
  0xca   :  { %1355 = vmatmul.mubr.msk.f32.vlgmr.msra.gmra.mrb[2].mxu1 %vm194_vm1, %v2026_v18  ;;  %1359 = vmatprep.mubr.msk.f32.mxu0 %vm1785_vm0, %v1786_v1 }
  0xcb   :  { %1364 = vmatprep.mubr.msk.f32.mxu1 %vm1785_vm0, %v1786_v1 }
 0x194   :  { %v264_v28 = vpop.f32.mrb[0].mxu0 }
 0x195   :  { %v1323_v29 = vpop.f32.mrb[1].mxu0  ;;  %v348_v30 = vpop.f32.mrb[0].mxu1  ;;  %v265_v42 = vadd.f32 %v1239_v35, %v264_v28 }
 0x196   :  { %v1334_v31 = vpop.f32.mrb[1].mxu1  ;;  %v349_v43 = vadd.f32 %v1241_v39, %v348_v30  ;;  %v851_v30 = vadd.f32 %v2029_v20, %v2026_v18  ;;  %v944_v39 = vld [vmem:[#allocation13 + $0x10] sm:$0xff] }
 0x19c   :  { %v429_v34 = vpop.f32.mrb[2].mxu0 }
 0x19d   :  { %v430_v36 = vadd.f32 %v1243_v32, %v429_v34  ;;  %v510_v37 = vpop.f32.mrb[2].mxu1  ;;  %v1345_v38 = vpop.f32.mrb[3].mxu0  ;;  %v943_v34 = vld [vmem:[#allocation13 + $0x8] sm:$0xff] }
 0x19e   :  { %v511_v40 = vadd.f32 %v1245_v33, %v510_v37  ;;  %v1356_v41 = vpop.f32.mrb[3].mxu1  ;;  %v942_v33 = vld [vmem:[#allocation13] sm:$0xff] }
 0x19f   :  { %1358 = vmatpush3.xpose.msk.msra.mxu0 %vm194_vm1, %v430_v36  ;;  %v1452_v38 = vpack.c.bf16 %v943_v34, %v942_v33 }
 0x1a0   :  { %1363 = vmatpush3.xpose.msk.msra.mxu1 %vm194_vm1, %v511_v40  ;;  %1367 = vmatprep.subr.mxu0 %v1786_v1 }
 0x1a1   :  { %1372 = vmatprep.subr.mxu1 %v1786_v1 }
 0x1a2   :  { %1360 = vmatmul.mubr.msk.f32.vlgmr.msra.gmra.mrb[4].mxu0 %vm194_vm1, %v265_v42  ;;  %v945_v42 = vld [vmem:[#allocation13 + $0x18] sm:$0xff] }
 0x1a3   :  { %1365 = vmatmul.mubr.msk.f32.vlgmr.msra.gmra.mrb[4].mxu1 %vm194_vm1, %v349_v43  ;;  %1368 = vmatpush3.msra.mxu0 %v2029_v20  ;;  %v1116_v43 = vld [vmem:[#allocation16] sm:$0xff] }
 0x1a4   :  { %1369 = vmatprep.mubr.msk.f32.mxu0 %vm1785_vm0, %v1786_v1  ;;  %1373 = vmatpush3.msra.mxu1 %v2026_v18 }
 0x1a5   :  { %1374 = vmatprep.mubr.msk.f32.mxu1 %vm1785_vm0, %v1786_v1  ;;  %1445 = vmatprep.subr.bf16.mxu0 %v1784_v0 }
 0x1a6   :  { %1457 = vmatprep.subr.bf16.mxu1 %v1784_v0 }
 0x275   :  { %v586_v44 = vpop.f32.mrb[4].mxu0 }
 0x276   :  { %v675_v45 = vpop.f32.mrb[4].mxu1  ;;  %v1361_v46 = vpop.f32.mrb[5].mxu0  ;;  %v591_v47 = vsel %vm590_vm2, %v586_v44, -inf }
 0x277   :  { %v1366_v48 = vpop.f32.mrb[5].mxu1  ;;  %592 = vmax.xlane.f32.xlu0 %v591_v47  ;;  %v679_v49 = vsel %vm590_vm2, %v675_v45, -inf  ;;  %v1455_v47 = vpack.c.bf16 %v945_v42, %v944_v39 }
 0x27b   :  { %680 = vmax.xlane.f32.xlu0 %v679_v49  ;;  %v1118_v49 = vld [vmem:[#allocation16 + $0x10] sm:$0xff] }
 0x304   :  { %v593_v50 = vpop.xlane.xlu0 %592 }
 0x305   :  { %v594_v51 = vsub.f32 %v586_v44, %v593_v50  ;;  %v1117_v44 = vld [vmem:[#allocation16 + $0x8] sm:$0xff]  ;;  %v1119_v50 = vld [vmem:[#allocation16 + $0x18] sm:$0xff] }
 0x306   :  { %v1464_v48 = vpack.c.bf16 %v1117_v44, %v1116_v43 }
 0x307   :  { %v595_v52 = vmul.f32 1.442695, %v594_v51  ;;  %v1467_v51 = vpack.c.bf16 %v1119_v50, %v1118_v49 }
 0x308   :  { %v681_v53 = vpop.xlane.xlu0 %680 }
 0x309   :  { %1493 = vpow2.f32 %v595_v52  ;;  %v682_v54 = vsub.f32 %v675_v45, %v681_v53  ;;  %v1257_v52 = vld [vmem:[%s2174_s13] ss:$0 sm:$0xff] }
 0x30b   :  { %v683_v55 = vmul.f32 1.442695, %v682_v54 }
 0x30d   :  { %1495 = vpow2.f32 %v683_v55 }
 0x313   :  { %v1494_v56 = vpop.eup %1493 }
 0x314   :  { %v597_v57 = vsel %vm590_vm2, %v1494_v56, 0.0 }
 0x315   :  { %598 = vadd.xlane.f32.xlu1 %v597_v57 }
 0x317   :  { %v1496_v58 = vpop.eup %1495 }
 0x318   :  { %v685_v59 = vsel %vm590_vm2, %v1496_v58, 0.0 }
 0x319   :  { %686 = vadd.xlane.f32.xlu1 %v685_v59 }
 0x3a2   :  { %v599_v60 = vpop.xlane.xlu1 %598 }
 0x3a3   :  { %1497 = vrcp.f32 %v599_v60 }
 0x3a6   :  { %v687_v61 = vpop.xlane.xlu1 %686 }
 0x3a7   :  { %1499 = vrcp.f32 %v687_v61 }
 0x3ad   :  { %v1498_v62 = vpop.eup %1497 }
 0x3ae   :  { %v601_v63 = vmul.f32 %v1498_v62, %v1494_v56 }
 0x3b0   :  { %v602_v2 = vmul.f32 0.17677669, %v601_v63 }
 0x3b1   :  { %v1500_v3 = vpop.eup %1499 }
 0x3b2   :  { %v689_v4 = vmul.f32 %v1500_v3, %v1496_v58  ;;  %1370 = vmatmul.mubr.msk.f32.vlgmr.msra.gmra.mrb[6].mxu0 %vm590_vm2, %v602_v2 }
 0x3b3   :  { %1385 = vmatprep.mubr.msk.f32.mxu0 %vm1785_vm0, %v1786_v1  ;;  %1447 = vmatpush3.bf16.msra.mxu0 %v1446_v8 }
 0x3b4   :  { %v690_v5 = vmul.f32 0.17677669, %v689_v4  ;;  %1448 = vmatprep.subr.bf16.mxu0 %v1784_v0 }
 0x3b6   :  { %1375 = vmatmul.mubr.msk.f32.vlgmr.msra.gmra.mrb[6].mxu1 %vm590_vm2, %v690_v5 }
 0x3b7   :  { %1407 = vmatprep.mubr.msk.f32.mxu1 %vm1785_vm0, %v1786_v1  ;;  %1450 = vmatpush3.bf16.msra.mxu0 %v1449_v12 }
 0x3b8   :  { %1459 = vmatpush3.bf16.msra.mxu1 %v1458_v14  ;;  %1451 = vmatprep.subr.bf16.mxu0 %v1784_v0 }
 0x3b9   :  { %1460 = vmatprep.subr.bf16.mxu1 %v1784_v0 }
 0x3bc   :  { %1462 = vmatpush3.bf16.msra.mxu1 %v1461_v17 }
 0x3bd   :  { %1463 = vmatprep.subr.bf16.mxu1 %v1784_v0 }
 0x485   :  { %v760_v19 = vpop.f32.mrb[6].mxu0 }
 0x486   :  { %v1252_v21 = vmul.f32 -1.442695, %v760_v19  ;;  %v1371_v22 = vpop.f32.mrb[7].mxu0 }
 0x488   :  { %1501 = vpow2.f32 %v1252_v21 }
 0x489   :  { %v839_v23 = vpop.f32.mrb[6].mxu1 }
 0x48a   :  { %v1254_v24 = vmul.f32 -1.442695, %v839_v23  ;;  %v1376_v25 = vpop.f32.mrb[7].mxu1 }
 0x48c   :  { %1503 = vpow2.f32 %v1254_v24 }
 0x492   :  { %v1502_v26 = vpop.eup %1501 }
 0x493   :  { %v767_v27 = vadd.f32 1.0, %v1502_v26 }
 0x495   :  { %1505 = vrcp.f32 %v767_v27 }
 0x496   :  { %v1504_v28 = vpop.eup %1503 }
 0x497   :  { %v846_v29 = vadd.f32 1.0, %v1504_v28 }
 0x499   :  { %1507 = vrcp.f32 %v846_v29 }
 0x49f   :  { %v1506_v31 = vpop.eup %1505 }
 0x4a0   :  { %v849_v32 = vsub.f32 1.0, %v1506_v31  ;;  %v852_v36 = vmul.f32 %v1506_v31, %v851_v30 }
 0x4a2   :  { %v850_v35 = vmul.f32 %v849_v32, %v2026_v18 }
 0x4a3   :  { %v1508_v37 = vpop.eup %1507 }
 0x4a4   :  { %v854_v40 = vsub.f32 1.0, %v1508_v37  ;;  %v2107_v41 = vadd.f32 %v852_v36, %v850_v35  ;;  %v856_v46 = vmul.f32 %v1508_v37, %v851_v30 }
 0x4a6   :  { %1386 = vmatmul.mubr.msk.f32.vlgmr.msra.gmra.mrb[8].mxu0 %vm194_vm1, %v2107_v41  ;;  %v855_v45 = vmul.f32 %v854_v40, %v2029_v20  ;;  %v1255_v20 = vld [vmem:[%s2172_s11] ss:$0 sm:$0xff]  ;;  %s1787_s11 = smov [#allocation17]  }
 0x4a7   :  { %1453 = vmatpush3.bf16.msra.mxu0 %v1452_v38  ;;  %1396 = vmatprep.mubr.msk.f32.mxu0 %vm1785_vm0, %v1786_v1  ;;  %v1469_v53 = vadd.f32 %v1257_v52, %v1255_v20  ;;  %s1212_s13 = sshll.u32 %s1787_s11, 4  ;;  %s1213_s13 = int_to_ptr.vmem [resolvable:$true] %s1212_s13 }
 0x4a8   :  { %1454 = vmatprep.subr.bf16.mxu0 %v1784_v0  ;;  %v857_v18 = vadd.f32 %v856_v46, %v855_v45  ;;  %s1715_s16 = scalar_lea.vmem %s1213_s13, 128  ;;  %p1720_p3 = scmp.lt.s32.totalorder %s1213_s13, %s1213_s13 }
 0x4a9   :  { %p1716_p2 = scmp.ne.s32.totalorder %s1213_s13, %s1715_s16  ;;  %p1721_p4 = scmp.lt.s32.totalorder %s1715_s16, %s1715_s16 }
 0x4aa   :  { %1408 = vmatmul.mubr.msk.f32.vlgmr.msra.gmra.mrb[8].mxu1 %vm194_vm1, %v857_v18 }
 0x4ab   :  { %1456 = vmatpush3.bf16.msra.mxu0 %v1455_v47  ;;  %1465 = vmatpush3.bf16.msra.mxu1 %v1464_v48  ;;  %p1722_p5 = por %p1721_p4, %p1720_p3 }
 0x4ac   :  { %1466 = vmatprep.subr.bf16.mxu1 %v1784_v0  ;;  %1418 = vmatprep.mubr.msk.f32.mxu1 %vm1785_vm0, %v1786_v1  ;;  %v1260_v0 = vld [vmem:[%s2176_s15] ss:$0 sm:$0xff]  ;;  %s1788_s15 = smov [#allocation18]  }
 0x4ad   :  { %v1262_v1 = vld [vmem:[%s2178_s17] ss:$0 sm:$0xff]  ;;  %s1222_s17 = sshll.u32 %s1788_s15, 4  ;;  %p1723_p6 = pnand %p1722_p5, %p1716_p2  ;;  %s1223_s17 = int_to_ptr.vmem [resolvable:$true] %s1222_s17 }
 0x4ae   :  { %1397 = vmatmul.mubr.msk.f32.vlgmr.msra.gmra.mrb[8].mxu0 %vm194_vm1, %v857_v18  ;;  %v1471_v57 = vadd.f32 %v1262_v1, %v1260_v0 }
 0x4af   :  { %1468 = vmatpush3.bf16.msra.mxu1 %v1467_v51 }
 0x4b2   :  { %1419 = vmatmul.mubr.msk.f32.vlgmr.msra.gmra.mrb[8].mxu1 %vm194_vm1, %v2107_v41 }
 0x581   :  { %v1022_v54 = vpop.f32.mrb[8].mxu0 }
 0x582   :  { %v1470_v55 = vadd.f32 %v1469_v53, %v1022_v54  ;;  %v1398_v56 = vpop.f32.mrb[9].mxu0 }
 0x584   :  { %v1259_v58 = vmul.f32 -1.442695, %v1470_v55 }
 0x585   :  { %v1193_v59 = vpop.f32.mrb[8].mxu1 }
 0x586   :  { %1509 = vpow2.f32 %v1259_v58  ;;  %v1472_v60 = vadd.f32 %v1471_v57, %v1193_v59  ;;  %v1420_v61 = vpop.f32.mrb[9].mxu1 }
 0x588   :  { %v1264_v62 = vmul.f32 -1.442695, %v1472_v60 }
 0x58a   :  { %1511 = vpow2.f32 %v1264_v62 }
 0x590   :  { %v1510_v63 = vpop.eup %1509 }
 0x591   :  { %v1030_v2 = vadd.f32 1.0, %v1510_v63 }
 0x593   :  { %1513 = vrcp.f32 %v1030_v2 }
 0x594   :  { %v1512_v3 = vpop.eup %1511 }
 0x595   :  { %v1201_v4 = vadd.f32 1.0, %v1512_v3 }
 0x597   :  { %1515 = vrcp.f32 %v1201_v4 }
 0x59d   :  { %v1514_v5 = vpop.eup %1513 }
 0x59e   :  { %v1033_v6 = vmul.f32 %v1514_v5, %v857_v18 }
 0x5a0   :  { %1034 = vst.msk [vmem:[#allocation17] sm:$0xff] %vm194_vm1, %v1033_v6 }
 0x5a1   :  { %v1516_v7 = vpop.eup %1515 }
 0x5a2   :  { %1726 = shalt.err (!%p1723_p6)
}
 0x5a3   :  { %s1727_s28 = scalar_lea.hbm %s2179_s18, 128 }
 0x5a4   :  { %p1728_p7 = scmp.ne.s32.totalorder %s2179_s18, %s1727_s28  ;;  %p1731_p8 = scmp.lt.u32.totalorder %s1727_s28, %s2179_s18 }
 0x5a6   :  { %p1733_p9 = pnand %p1731_p8, %p1728_p7 }
 0x5a8   :  { %1736 = shalt.err (!%p1733_p9)
}
 0x5a9   :  { %1215 = dma.vmem_to_hbm [thread:$0]  %s1213_s13, 128, %s2179_s18, [#allocation4]   ;;  %v1204_v8 = vmul.f32 %v1516_v7, %v2107_v41 }
 0x5aa   :  { %s1737_s7 = scalar_lea.vmem %s1223_s17, 128  ;;  %p1742_p11 = scmp.lt.s32.totalorder %s1223_s17, %s1223_s17 }
 0x5ab   :  { %1205 = vst.msk [vmem:[#allocation18] sm:$0xff] %vm194_vm1, %v1204_v8  ;;  %p1738_p10 = scmp.ne.s32.totalorder %s1223_s17, %s1737_s7  ;;  %p1743_p12 = scmp.lt.s32.totalorder %s1737_s7, %s1737_s7 }
 0x5ad   :  { %p1744_p13 = por %p1743_p12, %p1742_p11 }
 0x5af   :  { %p1745_p0 = pnand %p1744_p13, %p1738_p10 }
 0x5b1   :  { %1748 = shalt.err (!%p1745_p0)
}
 0x5b2   :  { %s1749_s2 = scalar_lea.hbm %s2180_s19, 128 }
 0x5b3   :  { %p1750_p1 = scmp.ne.s32.totalorder %s2180_s19, %s1749_s2  ;;  %p1753_p2 = scmp.lt.u32.totalorder %s1749_s2, %s2180_s19 }
 0x5b5   :  { %p1755_p3 = pnand %p1753_p2, %p1750_p1 }
 0x5b7   :  { %1758 = shalt.err (!%p1755_p3)
}
 0x5b8   :  { %1225 = dma.vmem_to_hbm [thread:$0]  %s1223_s17, 128, %s2180_s19, [#allocation19]  }
 0x5b9   :  { %1769 = dma.done.wait [#allocation4], 128  }
 0x5ba   :  { %1770 = vsyncadd [#allocation4], 4294967168 }
 0x5bb   :  { %1771 = dma.done.wait [#allocation19], 128  }
 0x5bc   :  { %1772 = vsyncadd [#allocation19], 4294967168 }
 0x5bd   :  { %1232 = vsyncpa [#allocation3], 1 }
 0x5be   :  { %1233 = vsyncpa [#allocation6], 1 }
 0x5bf   :  { %1234 = vsyncpa [#allocation9], 1 }
 0x5c0   :  { %1235 = vsyncpa [#allocation12], 1 }
 0x5c1   :  { %1236 = vsyncpa [#allocation15], 1 }
 0x5c2   :  { %1237 = vsyncpa [#allocation4], 1 }
 0x5c3   :  { %1238 = vsyncpa [#allocation19], 1 }

</bundles_post_ra>
